<compile_context>
chip_gen: v6e
topology: v6e:2x2x1
jax: 0.10.0
libtpu: 0.0.40
codegen_flags: <defaults>
</compile_context>

<pallas_src>
import jax
import jax.numpy as jnp
from jax.experimental import pallas as pl
from jax.experimental.pallas import tpu as pltpu


def _make_alpha_ee_kernel(d: int):
    """Kernel over one packed lane-dense block: p (d*d + d, Bt) -> out (1, Bt).

    Rows 0 .. d*d-1 of p are alpha flattened row-major (row i*d+j = alpha[:, i, j]),
    rows d*d .. d*d+d-1 are Eext (row d*d+j = Eext[:, j]); batch lives on the lane axis.
    """
    dd = d * d

    def kernel(p_ref, out_ref):
        # Eext rows for this batch tile, kept 2-D (1, Bt) so they stay lane-major.
        # f32 accumulation (no-op casts for f32 inputs).
        e = [p_ref[dd + j:dd + j + 1, :].astype(jnp.float32) for j in range(d)]

        acc = None
        for i in range(d):
            # m_i = sum_j alpha[i, j] * e_j        (3 mul + 2 add per lane)
            m_i = None
            for j in range(d):
                k = i * d + j
                t = p_ref[k:k + 1, :].astype(jnp.float32) * e[j]
                m_i = t if m_i is None else m_i + t
            term = e[i] * m_i                      # 1 mul
            acc = term if acc is None else acc + term
        out_ref[...] = acc.astype(out_ref.dtype)   # lane-dense (1, Bt) store

    return kernel


def alpha_ee(alpha, eext, *, block_b: int = 32768):
    """alpha: (B, D, D), eext: (B, D) -> (B, 1). Matches the PyTorch AlphaEE.forward."""
    B, D, D2 = alpha.shape
    assert D == D2 and eext.shape == (B, D)
    DD = D * D
    R = DD + D                                   # packed rows (12 for D=3)
    out_dtype = jnp.result_type(alpha.dtype, eext.dtype)

    # Tile must be a whole number of 128-lane groups.
    block_b = max(128, (block_b // 128) * 128)

    b128 = pl.cdiv(B, 128) * 128                 # batch rounded up to lane granularity
    n_steps = pl.cdiv(b128, block_b)
    # Prefer >=2 grid steps (when each step keeps >=128 lanes) so the "parallel" axis can be
    # sharded across 2 TensorCores (v7x) and the pipeline actually overlaps DMA with compute.
    if n_steps < 2 and b128 >= 2 * 128:
        n_steps = 2
    # Balanced tiles: padding bounded by ~128 lanes per step instead of up to a full tile.
    bt = pl.cdiv(pl.cdiv(b128, n_steps), 128) * 128
    b_pad = n_steps * bt

    # Pack alpha + Eext into one lane-dense (R, b_pad) operand (batch on the lane axis).
    packed = jnp.concatenate([alpha.reshape(B, DD), eext], axis=1)   # (B, R)
    if b_pad != B:
        packed = jnp.pad(packed, ((0, b_pad - B), (0, 0)))           # zero rows -> zero outputs
    packed = packed.T                                                # (R, b_pad)

    out = pl.pallas_call(
        _make_alpha_ee_kernel(D),
        out_shape=jax.ShapeDtypeStruct((1, b_pad), out_dtype),
        grid_spec=pltpu.PrefetchScalarGridSpec(
            num_scalar_prefetch=0,
            grid=(n_steps,),
            in_specs=[
                # Sublane dim R equals the full array dim (legal even though R=12 % 8 != 0);
                # lane dim bt is a multiple of 128 and divides b_pad exactly.
                pl.BlockSpec((R, bt), lambda i: (0, i)),
            ],
            out_specs=pl.BlockSpec((1, bt), lambda i: (0, i)),       # lane-dense output
        ),
        compiler_params=pltpu.CompilerParams(
            dimension_semantics=("parallel",),
        ),
    )(packed)

    # Reshape to the PyTorch (B, 1) result outside the kernel (cheap slice + reshape).
    return out[0, :B].reshape(B, 1)


def _reference(alpha, eext):
    # Mirrors the PyTorch forward exactly.
    return jnp.matmul(eext[:, None, :], jnp.matmul(alpha, eext[:, :, None])).reshape(-1, 1)


if __name__ == "__main__":
    key = jax.random.PRNGKey(0)
    k_alpha, k_e, k_alpha2, k_e2 = jax.random.split(key, 4)

    # Small example consistent with the module: batch of 3x3 polarizability tensors
    # and 3-vector external fields.
    B, D = 8, 3
    alpha = jax.random.normal(k_alpha, (B, D, D), dtype=jnp.float32)
    eext = jax.random.normal(k_e, (B, D), dtype=jnp.float32)

    out = jax.block_until_ready(alpha_ee(alpha, eext))
    ref = _reference(alpha, eext)
    assert out.shape == (B, 1)
    assert jnp.allclose(out, ref, atol=1e-5, rtol=1e-5)

    # Second check: non-multiple-of-128 batch with a small tile to exercise the padded,
    # multi-step (>=2 grid steps) path.
    B2 = 300
    alpha2 = jax.random.normal(k_alpha2, (B2, D, D), dtype=jnp.float32)
    eext2 = jax.random.normal(k_e2, (B2, D), dtype=jnp.float32)
    out2 = jax.block_until_ready(alpha_ee(alpha2, eext2, block_b=256))
    ref2 = _reference(alpha2, eext2)
    assert out2.shape == (B2, 1)
    assert jnp.allclose(out2, ref2, atol=1e-5, rtol=1e-5)

    print("KERNEL_OK")
</pallas_src>

<mosaic_0001>
module attributes {stable_mosaic.version = 11 : i64} {
  func.func @kernel(%arg0: i32, %arg1: memref<12x128xf32, #tpu.memory_space<vmem>>, %arg2: memref<1x128xf32, #tpu.memory_space<vmem>>) attributes {dimension_semantics = [#tpu.dimension_semantics<parallel>], iteration_bounds = array<i64: 1>, scalar_prefetch = 0 : i64, scratch_operands = 0 : i64, tpu.core_type = #tpu.core_type<tc>, window_params = [{transform_indices = @transform_0, window_bounds = array<i64: 12, 128>}, {transform_indices = @transform_1, window_bounds = array<i64: 1, 128>}]} {
    %c9 = arith.constant 9 : index
    %c0 = arith.constant 0 : index
    %0 = vector.load %arg1[%c9, %c0] : memref<12x128xf32, #tpu.memory_space<vmem>>, vector<1x128xf32>
    %c10 = arith.constant 10 : index
    %c0_0 = arith.constant 0 : index
    %1 = vector.load %arg1[%c10, %c0_0] : memref<12x128xf32, #tpu.memory_space<vmem>>, vector<1x128xf32>
    %c11 = arith.constant 11 : index
    %c0_1 = arith.constant 0 : index
    %2 = vector.load %arg1[%c11, %c0_1] : memref<12x128xf32, #tpu.memory_space<vmem>>, vector<1x128xf32>
    %c0_2 = arith.constant 0 : index
    %c0_3 = arith.constant 0 : index
    %3 = vector.load %arg1[%c0_2, %c0_3] : memref<12x128xf32, #tpu.memory_space<vmem>>, vector<1x128xf32>
    %4 = arith.mulf %3, %0 : vector<1x128xf32>
    %c1 = arith.constant 1 : index
    %c0_4 = arith.constant 0 : index
    %5 = vector.load %arg1[%c1, %c0_4] : memref<12x128xf32, #tpu.memory_space<vmem>>, vector<1x128xf32>
    %6 = arith.mulf %5, %1 : vector<1x128xf32>
    %7 = arith.addf %4, %6 : vector<1x128xf32>
    %c2 = arith.constant 2 : index
    %c0_5 = arith.constant 0 : index
    %8 = vector.load %arg1[%c2, %c0_5] : memref<12x128xf32, #tpu.memory_space<vmem>>, vector<1x128xf32>
    %9 = arith.mulf %8, %2 : vector<1x128xf32>
    %10 = arith.addf %7, %9 : vector<1x128xf32>
    %11 = arith.mulf %0, %10 : vector<1x128xf32>
    %c3 = arith.constant 3 : index
    %c0_6 = arith.constant 0 : index
    %12 = vector.load %arg1[%c3, %c0_6] : memref<12x128xf32, #tpu.memory_space<vmem>>, vector<1x128xf32>
    %13 = arith.mulf %12, %0 : vector<1x128xf32>
    %c4 = arith.constant 4 : index
    %c0_7 = arith.constant 0 : index
    %14 = vector.load %arg1[%c4, %c0_7] : memref<12x128xf32, #tpu.memory_space<vmem>>, vector<1x128xf32>
    %15 = arith.mulf %14, %1 : vector<1x128xf32>
    %16 = arith.addf %13, %15 : vector<1x128xf32>
    %c5 = arith.constant 5 : index
    %c0_8 = arith.constant 0 : index
    %17 = vector.load %arg1[%c5, %c0_8] : memref<12x128xf32, #tpu.memory_space<vmem>>, vector<1x128xf32>
    %18 = arith.mulf %17, %2 : vector<1x128xf32>
    %19 = arith.addf %16, %18 : vector<1x128xf32>
    %20 = arith.mulf %1, %19 : vector<1x128xf32>
    %21 = arith.addf %11, %20 : vector<1x128xf32>
    %c6 = arith.constant 6 : index
    %c0_9 = arith.constant 0 : index
    %22 = vector.load %arg1[%c6, %c0_9] : memref<12x128xf32, #tpu.memory_space<vmem>>, vector<1x128xf32>
    %23 = arith.mulf %22, %0 : vector<1x128xf32>
    %c7 = arith.constant 7 : index
    %c0_10 = arith.constant 0 : index
    %24 = vector.load %arg1[%c7, %c0_10] : memref<12x128xf32, #tpu.memory_space<vmem>>, vector<1x128xf32>
    %25 = arith.mulf %24, %1 : vector<1x128xf32>
    %26 = arith.addf %23, %25 : vector<1x128xf32>
    %c8 = arith.constant 8 : index
    %c0_11 = arith.constant 0 : index
    %27 = vector.load %arg1[%c8, %c0_11] : memref<12x128xf32, #tpu.memory_space<vmem>>, vector<1x128xf32>
    %28 = arith.mulf %27, %2 : vector<1x128xf32>
    %29 = arith.addf %26, %28 : vector<1x128xf32>
    %30 = arith.mulf %2, %29 : vector<1x128xf32>
    %31 = arith.addf %21, %30 : vector<1x128xf32>
    %c0_12 = arith.constant 0 : index
    %c0_13 = arith.constant 0 : index
    %32 = vector.load %arg2[%c0_12, %c0_13] : memref<1x128xf32, #tpu.memory_space<vmem>>, vector<1x128xf32>
    tpu.vector_store %arg2[%c0_12, %c0_13], %31 {strides = array<i32>} : memref<1x128xf32, #tpu.memory_space<vmem>>, vector<1x128xf32>,
    return
  }
  func.func @transform_0(%arg0: i32) -> (i32, i32) {
    %c0_i32 = arith.constant 0 : i32
    %c0_i32_0 = arith.constant 0 : i32
    return %c0_i32, %arg0 : i32, i32
  }
  func.func @transform_1(%arg0: i32) -> (i32, i32) {
    %c0_i32 = arith.constant 0 : i32
    %c0_i32_0 = arith.constant 0 : i32
    return %c0_i32, %arg0 : i32, i32
  }
}

</mosaic_0001>

<bundles_post_ra>
// kernel: tpu_custom_call.1
= control target key start
LH: loop header
LB: loop body
LE: loop exit
PB: predicated region body
PF: predicated region fallthrough
CT: control target
= control target key end

     0   :  { %6 = vsyncpa [#allocation3], 0  ;;  %s139_s0 = inlined_call_operand.hbm [shape: f32[12,128], index: 0, kind: input, shape index: {}]   ;;  %s140_s1 = inlined_call_operand.hbm [shape: f32[1,128], index: 1, kind: output, shape index: {}]  }
   0x1   :  { %7 = vsyncpa [#allocation4], 0  ;;  %s119_s6 = smov [#allocation2]  }
   0x2   :  { %s13_s7 = sshll.u32 %s119_s6, 4  ;;  %s14_s7 = int_to_ptr.vmem [resolvable:$true] %s13_s7 }
   0x3   :  { %s83_s8 = scalar_lea.vmem %s14_s7, 256  ;;  %p88_p1 = scmp.lt.s32.totalorder %s14_s7, %s14_s7 }
   0x4   :  { %p84_p0 = scmp.ne.s32.totalorder %s14_s7, %s83_s8  ;;  %p89_p2 = scmp.lt.s32.totalorder %s83_s8, %s83_s8 }
   0x6   :  { %p90_p3 = por %p89_p2, %p88_p1 }
   0x8   :  { %p91_p4 = pnand %p90_p3, %p84_p0 }
   0xa   :  { %94 = shalt.err (!%p91_p4)
}
   0xb   :  { %s120_s9 = smov 128   ;;  %s121_s10 = smov 8  }
   0xc   :  { %19 = dma.hbm_to_vmem [thread:$0]  %s139_s0, 256, %s14_s7, [#allocation3], %s120_s9, %s120_s9, %s121_s10  }
   0xd   :  { %115 = dma.done.wait [#allocation3], 256  }
   0xe   :  { %116 = vsyncadd [#allocation3], 4294967040  ;;  %v23_v0 = vld [vmem:[#allocation2 + $0x9] sm:$0x1]  ;;  %v24_v1 = vld [vmem:[#allocation2 + $0xa] sm:$0x1] }
   0xf   :  { %v25_v2 = vld [vmem:[#allocation2 + $0xb] sm:$0x1]  ;;  %v26_v3 = vld [vmem:[#allocation2] sm:$0x1]  ;;  %v28_v4 = vld [vmem:[#allocation2 + $0x1] sm:$0x1] }
  0x10   :  { %v31_v5 = vld [vmem:[#allocation2 + $0x2] sm:$0x1]  ;;  %v27_v6 = vmul.f32 %v26_v3, %v23_v0  ;;  %v29_v7 = vmul.f32 %v28_v4, %v24_v1  ;;  %v35_v9 = vld [vmem:[#allocation2 + $0x3] sm:$0x1]  ;;  %v37_v10 = vld [vmem:[#allocation2 + $0x4] sm:$0x1] }
  0x11   :  { %v32_v8 = vmul.f32 %v31_v5, %v25_v2  ;;  %v40_v11 = vld [vmem:[#allocation2 + $0x5] sm:$0x1]  ;;  %v36_v12 = vmul.f32 %v35_v9, %v23_v0  ;;  %v38_v13 = vmul.f32 %v37_v10, %v24_v1  ;;  %v45_v15 = vld [vmem:[#allocation2 + $0x6] sm:$0x1]  ;;  %v47_v16 = vld [vmem:[#allocation2 + $0x7] sm:$0x1] }
  0x12   :  { %v41_v14 = vmul.f32 %v40_v11, %v25_v2  ;;  %v50_v17 = vld [vmem:[#allocation2 + $0x8] sm:$0x1]  ;;  %v30_v18 = vadd.f32 %v29_v7, %v27_v6  ;;  %v46_v19 = vmul.f32 %v45_v15, %v23_v0  ;;  %v48_v20 = vmul.f32 %v47_v16, %v24_v1  ;;  %s122_s0 = smov [#allocation5]  }
  0x13   :  { %v51_v21 = vmul.f32 %v50_v17, %v25_v2  ;;  %v39_v22 = vadd.f32 %v38_v13, %v36_v12  ;;  %s62_s13 = sshll.u32 %s122_s0, 4  ;;  %s63_s13 = int_to_ptr.vmem [resolvable:$true] %s62_s13 }
  0x14   :  { %v33_v23 = vadd.f32 %v32_v8, %v30_v18  ;;  %v49_v24 = vadd.f32 %v48_v20, %v46_v19  ;;  %s95_s14 = scalar_lea.vmem %s63_s13, 16  ;;  %s99_s15 = scalar_lea.vmem %s63_s13, 32 }
  0x15   :  { %v42_v25 = vadd.f32 %v41_v14, %v39_v22  ;;  %p96_p5 = scmp.ne.s32.totalorder %s63_s13, %s95_s14  ;;  %p100_p6 = scmp.lt.s32.totalorder %s63_s13, %s63_s13 }
  0x16   :  { %v34_v26 = vmul.f32 %v33_v23, %v23_v0  ;;  %v52_v27 = vadd.f32 %v51_v21, %v49_v24  ;;  %p101_p7 = scmp.lt.s32.totalorder %s99_s15, %s95_s14 }
  0x17   :  { %v43_v28 = vmul.f32 %v42_v25, %v24_v1 }
  0x18   :  { %v53_v29 = vmul.f32 %v52_v27, %v25_v2  ;;  %p102_p8 = por %p101_p7, %p100_p6 }
  0x19   :  { %v44_v30 = vadd.f32 %v43_v28, %v34_v26 }
  0x1a   :  { %p103_p9 = pnand %p102_p8, %p96_p5 }
  0x1b   :  { %v54_v31 = vadd.f32 %v53_v29, %v44_v30 }
  0x1d   :  { %55 = vst [vmem:[#allocation5] sm:$0x1] %v54_v31 }
  0x1e   :  { %106 = shalt.err (!%p103_p9)
}
  0x1f   :  { %65 = dma.vmem_to_hbm [thread:$0]  %s63_s13, 16, %s140_s1, [#allocation4]  }
  0x20   :  { %117 = dma.done.wait [#allocation4], 16  }
  0x21   :  { %118 = vsyncadd [#allocation4], 4294967280 }
  0x22   :  { %69 = vsyncpa [#allocation3], 1 }
  0x23   :  { %70 = vsyncpa [#allocation4], 1 }

</bundles_post_ra>
